<compile_context>
chip_gen: v7x
topology: tpu7x:2x2x1
jax: 0.10.0
libtpu: 0.0.40
codegen_flags: <defaults>
</compile_context>

<pallas_src>
import jax
import jax.numpy as jnp
from jax import lax
from jax.experimental import pallas as pl
from jax.experimental.pallas import tpu as pltpu
import numpy as np


def icnn_policy_grad_kernel(x_ref, w0_ref, b0_ref, w1_ref, b1_ref, w2_ref,
                            s0_ref, s1_ref, act_ref):
    x = x_ref[...]          # (Bt, obs_p)     batch on sublanes, features on lanes
    w0 = w0_ref[...]        # (h, obs_p)
    b0 = b0_ref[...]        # (1, h)
    w1 = w1_ref[...]        # (h, obs_p)
    b1 = b1_ref[...]        # (1, h)
    w2 = w2_ref[...]        # (1, obs_p)
    s0 = s0_ref[...]        # (h, h)  = softplus(U0) / h   (precomputed, 1/h folded in)
    s1 = s1_ref[...]        # (1, h)  = softplus(U1)

    f32 = jnp.float32
    # contract x's feature axis against the weights' in_features axis
    # (no explicit .T / XLU transpose).
    dims_nt = (((1,), (1,)), ((), ()))

    # --- ICNN forward (pre-activations) ------------------------------------
    a1 = lax.dot_general(x, w0, dims_nt, preferred_element_type=f32) + b0    # (Bt, h)
    z1 = jnp.logaddexp(a1, 0.0)                  # softplus(a1)
    g1 = 1.0 - jnp.exp(-z1)                      # sigmoid(a1), reuses z1 (one exp)

    a2 = (lax.dot_general(x, w1, dims_nt, preferred_element_type=f32) + b1
          + lax.dot_general(z1, s0, dims_nt, preferred_element_type=f32))    # (Bt, h)
    g2 = 0.5 * (jnp.tanh(0.5 * a2) + 1.0)        # sigmoid(a2), single EUP tanh

    # --- analytic Jacobian of the scalar output w.r.t. x --------------------
    # df/dx = w2 + sum_j s1_j g2_j (w1_j + sum_k s0_jk g1_k w0_k)
    v2 = g2 * s1                                                  # (Bt, h)
    t = jnp.dot(v2, s0, preferred_element_type=f32) * g1          # (Bt, h)
    grad = (w2
            + jnp.dot(v2, w1, preferred_element_type=f32)
            + jnp.dot(t, w0, preferred_element_type=f32))         # (Bt, obs_p)

    act_ref[...] = (-0.1 * grad).astype(act_ref.dtype)


def _round_up(n, m):
    return ((n + m - 1) // m) * m


def distributed_policy_forward(x, params, *, block_b=512):
    """action = -0.1 * vmap(jacrev(ICNN))(x).squeeze()  -> (B, obs), float32."""
    w0, b0, w1, b1, w2, b2, u0, u1 = params
    del b2  # constant offset: does not affect the Jacobian / the action
    B, obs = x.shape
    h = u0.shape[0]
    f32 = jnp.float32

    # --- x-independent parameter prep (done once, outside the grid) --------
    obs_p = _round_up(obs, 128)                     # lane-dense feature axis
    pad_o = obs_p - obs
    x_p = jnp.pad(x.astype(f32), ((0, 0), (0, pad_o)))
    w0_p = jnp.pad(w0.astype(f32), ((0, 0), (0, pad_o)))
    w1_p = jnp.pad(w1.astype(f32), ((0, 0), (0, pad_o)))
    w2_p = jnp.pad(w2.astype(f32), ((0, 0), (0, pad_o)))
    s0 = jax.nn.softplus(u0.astype(f32)) / float(h)  # (h, h), 1/h folded in
    s1 = jax.nn.softplus(u1.astype(f32))             # (1, h)
    b0 = b0.astype(f32)
    b1 = b1.astype(f32)

    # --- batch tiling (Bt multiple of 8; sized well inside v7x 32 MiB VMEM) --
    bt = _round_up(min(block_b, _round_up(B, 8)), 8)
    b_pad = _round_up(B, bt)
    if b_pad != B:
        x_p = jnp.pad(x_p, ((0, b_pad - B), (0, 0)))
    grid = (b_pad // bt,)

    def tile_map(i):
        return (i, 0)

    def const_map(i):
        return (0, 0)

    inputs = (x_p, w0_p, b0, w1_p, b1, w2_p, s0, s1)
    in_specs = [pl.BlockSpec((bt, obs_p), tile_map)]          # x: tiled over batch
    in_specs += [pl.BlockSpec(a.shape, const_map) for a in inputs[1:]]  # params resident

    out = pl.pallas_call(
        icnn_policy_grad_kernel,
        out_shape=jax.ShapeDtypeStruct((b_pad, obs_p), f32),
        grid_spec=pltpu.PrefetchScalarGridSpec(
            num_scalar_prefetch=0,
            grid=grid,
            in_specs=in_specs,
            out_specs=pl.BlockSpec((bt, obs_p), tile_map),
        ),
        compiler_params=pltpu.CompilerParams(
            dimension_semantics=("parallel",),
            vmem_limit_bytes=32 * 1024 * 1024,
        ),
    )(*inputs)

    return out[:B, :obs]


# ---------------------------------------------------------------------------
# Pure-JAX reference (mirrors torch.vmap(torch.func.jacrev(controller)))
# ---------------------------------------------------------------------------
def icnn_apply(params, x_single):
    w0, b0, w1, b1, w2, b2, u0, u1 = params
    h = u0.shape[0]
    sp = lambda t: jnp.logaddexp(t, 0.0)
    z1 = sp(x_single @ w0.T + b0[0])
    z2 = sp(x_single @ w1.T + b1[0] + z1 @ sp(u0).T / h)
    return x_single @ w2.T + b2[0] + z2 @ sp(u1).T / u1.shape[0]   # (1,)


def reference_forward(x, params):
    jac = jax.vmap(jax.jacrev(lambda xx: icnn_apply(params, xx)))(x)  # (B, 1, obs)
    return -jnp.squeeze(jac) * 0.1


if __name__ == "__main__":
    obs_dim, hidden_dim = 16, 32

    key = jax.random.PRNGKey(0)
    ks = jax.random.split(key, 9)
    scale = 0.3
    w0 = scale * jax.random.normal(ks[0], (hidden_dim, obs_dim), jnp.float32)
    b0 = scale * jax.random.normal(ks[1], (1, hidden_dim), jnp.float32)
    w1 = scale * jax.random.normal(ks[2], (hidden_dim, obs_dim), jnp.float32)
    b1 = scale * jax.random.normal(ks[3], (1, hidden_dim), jnp.float32)
    w2 = scale * jax.random.normal(ks[4], (1, obs_dim), jnp.float32)
    b2 = scale * jax.random.normal(ks[5], (1, 1), jnp.float32)
    u0 = scale * jax.random.normal(ks[6], (hidden_dim, hidden_dim), jnp.float32)
    u1 = scale * jax.random.normal(ks[7], (1, hidden_dim), jnp.float32)
    params = (w0, b0, w1, b1, w2, b2, u0, u1)

    # exercise both the exact-tile path (B=8) and the batch-padding path (B=13)
    for B in (8, 13):
        x = jax.random.normal(jax.random.fold_in(ks[8], B), (B, obs_dim), jnp.float32)

        action = jax.block_until_ready(distributed_policy_forward(x, params))
        action_ref = jax.block_until_ready(reference_forward(x, params))

        np.testing.assert_allclose(np.asarray(action), np.asarray(action_ref),
                                   rtol=2e-4, atol=2e-5)

    print("KERNEL_OK")
</pallas_src>

<mosaic_0001>
module attributes {stable_mosaic.version = 11 : i64} {
  func.func @icnn_policy_grad_kernel(%arg0: i32, %arg1: memref<8x128xf32, #tpu.memory_space<vmem>>, %arg2: memref<32x128xf32, #tpu.memory_space<vmem>>, %arg3: memref<1x32xf32, #tpu.memory_space<vmem>>, %arg4: memref<32x128xf32, #tpu.memory_space<vmem>>, %arg5: memref<1x32xf32, #tpu.memory_space<vmem>>, %arg6: memref<1x128xf32, #tpu.memory_space<vmem>>, %arg7: memref<32x32xf32, #tpu.memory_space<vmem>>, %arg8: memref<1x32xf32, #tpu.memory_space<vmem>>, %arg9: memref<8x128xf32, #tpu.memory_space<vmem>>) attributes {dimension_semantics = [#tpu.dimension_semantics<parallel>], iteration_bounds = array<i64: 1>, scalar_prefetch = 0 : i64, scratch_operands = 0 : i64, tpu.core_type = #tpu.core_type<tc>, window_params = [{transform_indices = @transform_0, window_bounds = array<i64: 8, 128>}, {pipeline_mode = #tpu.pipeline_mode<synchronous>, transform_indices = @transform_1, window_bounds = array<i64: 32, 128>}, {pipeline_mode = #tpu.pipeline_mode<synchronous>, transform_indices = @transform_2, window_bounds = array<i64: 1, 32>}, {pipeline_mode = #tpu.pipeline_mode<synchronous>, transform_indices = @transform_3, window_bounds = array<i64: 32, 128>}, {pipeline_mode = #tpu.pipeline_mode<synchronous>, transform_indices = @transform_4, window_bounds = array<i64: 1, 32>}, {pipeline_mode = #tpu.pipeline_mode<synchronous>, transform_indices = @transform_5, window_bounds = array<i64: 1, 128>}, {pipeline_mode = #tpu.pipeline_mode<synchronous>, transform_indices = @transform_6, window_bounds = array<i64: 32, 32>}, {pipeline_mode = #tpu.pipeline_mode<synchronous>, transform_indices = @transform_7, window_bounds = array<i64: 1, 32>}, {transform_indices = @transform_8, window_bounds = array<i64: 8, 128>}]} {
    %c0 = arith.constant 0 : index
    %c0_0 = arith.constant 0 : index
    %0 = vector.load %arg1[%c0, %c0_0] : memref<8x128xf32, #tpu.memory_space<vmem>>, vector<8x128xf32>
    %c0_1 = arith.constant 0 : index
    %c0_2 = arith.constant 0 : index
    %1 = vector.load %arg2[%c0_1, %c0_2] : memref<32x128xf32, #tpu.memory_space<vmem>>, vector<32x128xf32>
    %c0_3 = arith.constant 0 : index
    %c0_4 = arith.constant 0 : index
    %2 = vector.load %arg3[%c0_3, %c0_4] : memref<1x32xf32, #tpu.memory_space<vmem>>, vector<1x32xf32>
    %c0_5 = arith.constant 0 : index
    %c0_6 = arith.constant 0 : index
    %3 = vector.load %arg4[%c0_5, %c0_6] : memref<32x128xf32, #tpu.memory_space<vmem>>, vector<32x128xf32>
    %c0_7 = arith.constant 0 : index
    %c0_8 = arith.constant 0 : index
    %4 = vector.load %arg5[%c0_7, %c0_8] : memref<1x32xf32, #tpu.memory_space<vmem>>, vector<1x32xf32>
    %c0_9 = arith.constant 0 : index
    %c0_10 = arith.constant 0 : index
    %5 = vector.load %arg6[%c0_9, %c0_10] : memref<1x128xf32, #tpu.memory_space<vmem>>, vector<1x128xf32>
    %c0_11 = arith.constant 0 : index
    %c0_12 = arith.constant 0 : index
    %6 = vector.load %arg7[%c0_11, %c0_12] : memref<32x32xf32, #tpu.memory_space<vmem>>, vector<32x32xf32>
    %c0_13 = arith.constant 0 : index
    %c0_14 = arith.constant 0 : index
    %7 = vector.load %arg8[%c0_13, %c0_14] : memref<1x32xf32, #tpu.memory_space<vmem>>, vector<1x32xf32>
    %cst = arith.constant dense<0.000000e+00> : vector<8x32xf32>
    %8 = tpu.matmul %0, %1, %cst {dimension_numbers = #tpu.dot_dimension_numbers<[1], [1], [0], [0], [0, 0, 1, 0], [], []>} : vector<8x128xf32>, vector<32x128xf32>, vector<8x32xf32> -> vector<8x32xf32>
    %9 = vector.broadcast %2 : vector<1x32xf32> to vector<8x32xf32>
    %10 = arith.addf %8, %9 : vector<8x32xf32>
    %cst_15 = arith.constant 0.000000e+00 : f32
    %11 = vector.broadcast %cst_15 : f32 to vector<8x32xf32>
    %12 = arith.maximumf %10, %11 : vector<8x32xf32>
    %13 = vector.broadcast %cst_15 : f32 to vector<8x32xf32>
    %14 = arith.subf %10, %13 : vector<8x32xf32>
    %15 = arith.cmpf one, %14, %14 : vector<8x32xf32>
    %16 = vector.broadcast %cst_15 : f32 to vector<8x32xf32>
    %17 = arith.addf %10, %16 : vector<8x32xf32>
    %18 = math.absf %14 : vector<8x32xf32>
    %cst_16 = arith.constant 0.000000e+00 : f32
    %19 = vector.broadcast %cst_16 : f32 to vector<8x32xf32>
    %20 = arith.subf %19, %18 : vector<8x32xf32>
    %21 = math.exp %20 : vector<8x32xf32>
    %22 = math.log1p %21 : vector<8x32xf32>
    %23 = arith.addf %12, %22 : vector<8x32xf32>
    %24 = arith.select %15, %17, %23 : vector<8x32xi1>, vector<8x32xf32>
    %cst_17 = arith.constant 0.000000e+00 : f32
    %25 = vector.broadcast %cst_17 : f32 to vector<8x32xf32>
    %26 = arith.subf %25, %24 : vector<8x32xf32>
    %27 = math.exp %26 : vector<8x32xf32>
    %cst_18 = arith.constant 1.000000e+00 : f32
    %28 = vector.broadcast %cst_18 : f32 to vector<8x32xf32>
    %29 = arith.subf %28, %27 : vector<8x32xf32>
    %cst_19 = arith.constant dense<0.000000e+00> : vector<8x32xf32>
    %30 = tpu.matmul %0, %3, %cst_19 {dimension_numbers = #tpu.dot_dimension_numbers<[1], [1], [0], [0], [0, 0, 1, 0], [], []>} : vector<8x128xf32>, vector<32x128xf32>, vector<8x32xf32> -> vector<8x32xf32>
    %31 = vector.broadcast %4 : vector<1x32xf32> to vector<8x32xf32>
    %32 = arith.addf %30, %31 : vector<8x32xf32>
    %cst_20 = arith.constant dense<0.000000e+00> : vector<8x32xf32>
    %33 = tpu.matmul %24, %6, %cst_20 {dimension_numbers = #tpu.dot_dimension_numbers<[1], [1], [0], [0], [0, 0, 1, 0], [], []>} : vector<8x32xf32>, vector<32x32xf32>, vector<8x32xf32> -> vector<8x32xf32>
    %34 = arith.addf %32, %33 : vector<8x32xf32>
    %cst_21 = arith.constant 5.000000e-01 : f32
    %35 = vector.broadcast %cst_21 : f32 to vector<8x32xf32>
    %36 = arith.mulf %35, %34 : vector<8x32xf32>
    %37 = math.tanh %36 : vector<8x32xf32>
    %cst_22 = arith.constant 1.000000e+00 : f32
    %38 = vector.broadcast %cst_22 : f32 to vector<8x32xf32>
    %39 = arith.addf %37, %38 : vector<8x32xf32>
    %cst_23 = arith.constant 5.000000e-01 : f32
    %40 = vector.broadcast %cst_23 : f32 to vector<8x32xf32>
    %41 = arith.mulf %40, %39 : vector<8x32xf32>
    %42 = vector.broadcast %7 : vector<1x32xf32> to vector<8x32xf32>
    %43 = arith.mulf %41, %42 : vector<8x32xf32>
    %cst_24 = arith.constant dense<0.000000e+00> : vector<8x32xf32>
    %44 = tpu.matmul %43, %6, %cst_24 {dimension_numbers = #tpu.dot_dimension_numbers<[1], [0], [0], [1], [0, 0, 1, 1], [], []>} : vector<8x32xf32>, vector<32x32xf32>, vector<8x32xf32> -> vector<8x32xf32>
    %45 = arith.mulf %44, %29 : vector<8x32xf32>
    %cst_25 = arith.constant dense<0.000000e+00> : vector<8x128xf32>
    %46 = tpu.matmul %43, %3, %cst_25 {dimension_numbers = #tpu.dot_dimension_numbers<[1], [0], [0], [1], [0, 0, 1, 1], [], []>} : vector<8x32xf32>, vector<32x128xf32>, vector<8x128xf32> -> vector<8x128xf32>
    %47 = vector.broadcast %5 : vector<1x128xf32> to vector<8x128xf32>
    %48 = arith.addf %47, %46 : vector<8x128xf32>
    %cst_26 = arith.constant dense<0.000000e+00> : vector<8x128xf32>
    %49 = tpu.matmul %45, %1, %cst_26 {dimension_numbers = #tpu.dot_dimension_numbers<[1], [0], [0], [1], [0, 0, 1, 1], [], []>} : vector<8x32xf32>, vector<32x128xf32>, vector<8x128xf32> -> vector<8x128xf32>
    %50 = arith.addf %48, %49 : vector<8x128xf32>
    %cst_27 = arith.constant -1.000000e-01 : f32
    %51 = vector.broadcast %cst_27 : f32 to vector<8x128xf32>
    %52 = arith.mulf %51, %50 : vector<8x128xf32>
    %c0_28 = arith.constant 0 : index
    %c0_29 = arith.constant 0 : index
    %53 = vector.load %arg9[%c0_28, %c0_29] : memref<8x128xf32, #tpu.memory_space<vmem>>, vector<8x128xf32>
    tpu.vector_store %arg9[%c0_28, %c0_29], %52 {strides = array<i32>} : memref<8x128xf32, #tpu.memory_space<vmem>>, vector<8x128xf32>,
    return
  }
  func.func @transform_0(%arg0: i32) -> (i32, i32) {
    %c0_i32 = arith.constant 0 : i32
    %c0_i32_0 = arith.constant 0 : i32
    return %arg0, %c0_i32 : i32, i32
  }
  func.func @transform_1(%arg0: i32) -> (i32, i32) {
    %c0_i32 = arith.constant 0 : i32
    %c0_i32_0 = arith.constant 0 : i32
    %c0_i32_1 = arith.constant 0 : i32
    return %c0_i32, %c0_i32_0 : i32, i32
  }
  func.func @transform_2(%arg0: i32) -> (i32, i32) {
    %c0_i32 = arith.constant 0 : i32
    %c0_i32_0 = arith.constant 0 : i32
    %c0_i32_1 = arith.constant 0 : i32
    return %c0_i32, %c0_i32_0 : i32, i32
  }
  func.func @transform_3(%arg0: i32) -> (i32, i32) {
    %c0_i32 = arith.constant 0 : i32
    %c0_i32_0 = arith.constant 0 : i32
    %c0_i32_1 = arith.constant 0 : i32
    return %c0_i32, %c0_i32_0 : i32, i32
  }
  func.func @transform_4(%arg0: i32) -> (i32, i32) {
    %c0_i32 = arith.constant 0 : i32
    %c0_i32_0 = arith.constant 0 : i32
    %c0_i32_1 = arith.constant 0 : i32
    return %c0_i32, %c0_i32_0 : i32, i32
  }
  func.func @transform_5(%arg0: i32) -> (i32, i32) {
    %c0_i32 = arith.constant 0 : i32
    %c0_i32_0 = arith.constant 0 : i32
    %c0_i32_1 = arith.constant 0 : i32
    return %c0_i32, %c0_i32_0 : i32, i32
  }
  func.func @transform_6(%arg0: i32) -> (i32, i32) {
    %c0_i32 = arith.constant 0 : i32
    %c0_i32_0 = arith.constant 0 : i32
    %c0_i32_1 = arith.constant 0 : i32
    return %c0_i32, %c0_i32_0 : i32, i32
  }
  func.func @transform_7(%arg0: i32) -> (i32, i32) {
    %c0_i32 = arith.constant 0 : i32
    %c0_i32_0 = arith.constant 0 : i32
    %c0_i32_1 = arith.constant 0 : i32
    return %c0_i32, %c0_i32_0 : i32, i32
  }
  func.func @transform_8(%arg0: i32) -> (i32, i32) {
    %c0_i32 = arith.constant 0 : i32
    %c0_i32_0 = arith.constant 0 : i32
    return %arg0, %c0_i32 : i32, i32
  }
}

</mosaic_0001>

<bundles_post_ra>
// kernel: tpu_custom_call.1
= control target key start
LH: loop header
LB: loop body
LE: loop exit
PB: predicated region body
PF: predicated region fallthrough
CT: control target
= control target key end

     0   :  { %13 = vsyncpa [#allocation3], 0  ;;  %s1078_s0 = inlined_call_operand.hbm [shape: f32[8,128], index: 0, kind: input, shape index: {}]   ;;  %s1079_s1 = inlined_call_operand.hbm [shape: f32[32,128], index: 1, kind: input, shape index: {}]   ;;  %s1080_s2 = inlined_call_operand.vmem [shape: f32[1,32], index: 2, kind: input, shape index: {}]   ;;  %s1081_s3 = inlined_call_operand.hbm [shape: f32[32,128], index: 3, kind: input, shape index: {}]   ;;  %s1082_s4 = inlined_call_operand.vmem [shape: f32[1,32], index: 4, kind: input, shape index: {}]   ;;  %s1083_s5 = inlined_call_operand.vmem [shape: f32[1,128], index: 5, kind: input, shape index: {}]   ;;  %s1084_s6 = inlined_call_operand.hbm [shape: f32[32,32], index: 6, kind: input, shape index: {}]   ;;  %s1085_s7 = inlined_call_operand.vmem [shape: f32[1,32], index: 7, kind: input, shape index: {}]   ;;  %s1086_s8 = inlined_call_operand.hbm [shape: f32[8,128], index: 8, kind: output, shape index: {}]  }
   0x1   :  { %14 = vsyncpa [#allocation6], 0 }
   0x2   :  { %15 = vsyncpa [#allocation9], 0 }
   0x3   :  { %16 = vsyncpa [#allocation4], 0  ;;  %s904_s27 = smov [#allocation5]   ;;  %s786_s9 = scalar_lea.hbm %s1079_s1, 512 }
   0x4   :  { %s32_s28 = sshll.u32 %s904_s27, 4  ;;  %p787_p0 = scmp.ne.s32.totalorder %s1079_s1, %s786_s9  ;;  %s33_s28 = int_to_ptr.vmem [resolvable:$true] %s32_s28 }
   0x5   :  { %p790_p1 = scmp.lt.u32.totalorder %s786_s9, %s1079_s1 }
   0x7   :  { %p792_p2 = pnand %p790_p1, %p787_p0 }
   0x9   :  { %795 = shalt.err (!%p792_p2)
}
   0xa   :  { %s796_s14 = scalar_lea.vmem %s33_s28, 512  ;;  %p801_p4 = scmp.lt.s32.totalorder %s33_s28, %s33_s28 }
   0xb   :  { %p797_p3 = scmp.ne.s32.totalorder %s33_s28, %s796_s14  ;;  %p802_p5 = scmp.lt.s32.totalorder %s796_s14, %s796_s14 }
   0xd   :  { %p803_p6 = por %p802_p5, %p801_p4 }
   0xf   :  { %p804_p7 = pnand %p803_p6, %p797_p3 }
  0x11   :  { %807 = shalt.err (!%p804_p7)
}
  0x12   :  { %s905_s15 = smov 128   ;;  %s906_s16 = smov 8  }
  0x13   :  { %38 = dma.hbm_to_vmem [thread:$0]  %s1079_s1, 512, %s33_s28, [#allocation6], %s905_s15, %s905_s15, %s906_s16  }
  0x14   :  { %s907_s19 = smov [#allocation2]   ;;  %s908_s21 = smov [#allocation7]  }
  0x15   :  { %s23_s20 = sshll.u32 %s907_s19, 4  ;;  %s46_s22 = sshll.u32 %s908_s21, 4  ;;  %s24_s20 = int_to_ptr.vmem [resolvable:$true] %s23_s20  ;;  %s47_s22 = int_to_ptr.vmem [resolvable:$true] %s46_s22 }
  0x16   :  { %s808_s25 = scalar_lea.hbm %s1078_s0, 128 }
  0x17   :  { %p809_p8 = scmp.ne.s32.totalorder %s1078_s0, %s808_s25  ;;  %p812_p9 = scmp.lt.u32.totalorder %s808_s25, %s1078_s0 }
  0x19   :  { %p814_p10 = pnand %p812_p9, %p809_p8 }
  0x1b   :  { %817 = shalt.err (!%p814_p10)
}
  0x1c   :  { %s818_s1 = scalar_lea.vmem %s24_s20, 128  ;;  %p823_p12 = scmp.lt.s32.totalorder %s24_s20, %s24_s20 }
  0x1d   :  { %p819_p11 = scmp.ne.s32.totalorder %s24_s20, %s818_s1  ;;  %p824_p13 = scmp.lt.s32.totalorder %s818_s1, %s818_s1 }
  0x1f   :  { %p825_p0 = por %p824_p13, %p823_p12 }
  0x21   :  { %p826_p1 = pnand %p825_p0, %p819_p11 }
  0x23   :  { %829 = shalt.err (!%p826_p1)
}
  0x24   :  { %26 = dma.hbm_to_vmem [thread:$0]  %s1078_s0, 128, %s24_s20, [#allocation3]  }
  0x25   :  { %s830_s12 = scalar_lea.hbm %s1081_s3, 512 }
  0x26   :  { %p831_p2 = scmp.ne.s32.totalorder %s1081_s3, %s830_s12  ;;  %p834_p3 = scmp.lt.u32.totalorder %s830_s12, %s1081_s3 }
  0x28   :  { %p836_p4 = pnand %p834_p3, %p831_p2 }
  0x2a   :  { %839 = shalt.err (!%p836_p4)
}
  0x2b   :  { %s840_s19 = scalar_lea.vmem %s47_s22, 512  ;;  %p845_p6 = scmp.lt.s32.totalorder %s47_s22, %s47_s22 }
  0x2c   :  { %p841_p5 = scmp.ne.s32.totalorder %s47_s22, %s840_s19  ;;  %p846_p7 = scmp.lt.s32.totalorder %s840_s19, %s840_s19 }
  0x2e   :  { %p847_p8 = por %p846_p7, %p845_p6 }
  0x30   :  { %p848_p9 = pnand %p847_p8, %p841_p5 }
  0x32   :  { %851 = shalt.err (!%p848_p9)
}
  0x33   :  { %52 = dma.hbm_to_vmem [thread:$0]  %s1081_s3, 512, %s47_s22, [#allocation6], %s905_s15, %s905_s15, %s906_s16  }
  0x34   :  { %s909_s21 = smov [#allocation8]   ;;  %s852_s26 = scalar_lea.hbm %s1084_s6, 512 }
  0x35   :  { %s62_s23 = sshll.u32 %s909_s21, 4  ;;  %p853_p10 = scmp.ne.s32.totalorder %s1084_s6, %s852_s26  ;;  %s63_s23 = int_to_ptr.vmem [resolvable:$true] %s62_s23 }
  0x36   :  { %p856_p11 = scmp.lt.u32.totalorder %s852_s26, %s1084_s6 }
  0x38   :  { %p858_p12 = pnand %p856_p11, %p853_p10 }
  0x3a   :  { %861 = shalt.err (!%p858_p12)
}
  0x3b   :  { %s862_s28 = scalar_lea.vmem %s63_s23, 512  ;;  %p867_p0 = scmp.lt.s32.totalorder %s63_s23, %s63_s23 }
  0x3c   :  { %p863_p13 = scmp.ne.s32.totalorder %s63_s23, %s862_s28  ;;  %p868_p1 = scmp.lt.s32.totalorder %s862_s28, %s862_s28 }
  0x3e   :  { %p869_p2 = por %p868_p1, %p867_p0 }
  0x40   :  { %p870_p3 = pnand %p869_p2, %p863_p13 }
  0x42   :  { %873 = shalt.err (!%p870_p3)
}
  0x43   :  { %68 = dma.hbm_to_vmem [thread:$0]  %s1084_s6, 512, %s63_s23, [#allocation9], %s905_s15, %s905_s15, %s906_s16  }
  0x44   :  { %896 = dma.done.wait [#allocation3], 128  }
  0x45   :  { %897 = vsyncadd [#allocation3], 4294967168 }
  0x46   :  { %898 = dma.done.wait [#allocation6], 1024  }
  0x47   :  { %899 = vsyncadd [#allocation6], 4294966272 }
  0x48   :  { %900 = dma.done.wait [#allocation9], 512  }
  0x49   :  { %901 = vsyncadd [#allocation9], 4294966784  ;;  %v910_v0 = vmov 0.0|0.0   ;;  %vm911_vm0 = vmmov 0   ;;  %v912_v1 = vmov 0.0   ;;  %v84_v2 = vld [vmem:[#allocation5] sm:$0xff] }
  0x4a   :  { %724 = vmatprep.subr.bf16.mxu0 %v910_v0  ;;  %666 = vmatprep.mubr.msk.f32.mxu0 %vm911_vm0, %v912_v1  ;;  %v85_v3 = vld [vmem:[#allocation5 + $0x8] sm:$0xff]  ;;  %v86_v5 = vld [vmem:[#allocation5 + $0x10] sm:$0xff]  ;;  %v87_v6 = vld [vmem:[#allocation5 + $0x18] sm:$0xff]  ;;  %vm274_vm1 = vcmask 261120   ;;  %s913_s11 = smov [#allocation10]  }
  0x4b   :  { %730 = vmatprep.subr.bf16.mxu1 %v910_v0  ;;  %677 = vmatprep.mubr.msk.f32.mxu1 %vm911_vm0, %v912_v1  ;;  %v1022_v4 = vpack.c.bf16 %v85_v3, %v84_v2  ;;  %v1026_v7 = vpack.c.bf16 %v87_v6, %v86_v5  ;;  %v83_v8 = vld [vmem:[#allocation2] sm:$0xff]  ;;  %v89_v9 = vld [vmem:[#allocation7] sm:$0xff]  ;;  %v90_v10 = vld [vmem:[#allocation7 + $0x8] sm:$0xff]  ;;  %s605_s12 = sshll.u32 %s913_s11, 4  ;;  %s606_s12 = int_to_ptr.vmem [resolvable:$true] %s605_s12 }
  0x4c   :  { %v731_v11 = vpack.c.bf16 %v90_v10, %v89_v9  ;;  %v91_v12 = vld [vmem:[#allocation7 + $0x10] sm:$0xff]  ;;  %v92_v13 = vld [vmem:[#allocation7 + $0x18] sm:$0xff]  ;;  %v95_v14 = vld [vmem:[#allocation8] sm:$0xff]  ;;  %s874_s13 = scalar_lea.vmem %s606_s12, 128  ;;  %p879_p5 = scmp.lt.s32.totalorder %s606_s12, %s606_s12 }
  0x4d   :  { %726 = vmatpush3.bf16.xpose.msra.mxu0 %v1022_v4  ;;  %v96_v15 = vld [vmem:[#allocation8 + $0x8] sm:$0xff]  ;;  %v734_v17 = vpack.c.bf16 %v92_v13, %v91_v12  ;;  %v97_v18 = vld [vmem:[#allocation8 + $0x10] sm:$0xff]  ;;  %v98_v19 = vld [vmem:[#allocation8 + $0x18] sm:$0xff]  ;;  %p875_p4 = scmp.ne.s32.totalorder %s606_s12, %s874_s13  ;;  %p880_p6 = scmp.lt.s32.totalorder %s874_s13, %s874_s13 }
  0x4e   :  { %727 = vmatprep.subr.bf16.mxu0 %v910_v0  ;;  %732 = vmatpush3.bf16.xpose.msra.mxu1 %v731_v11  ;;  %v737_v16 = vpack.c.bf16 %v96_v15, %v95_v14  ;;  %v741_v20 = vpack.c.bf16 %v98_v19, %v97_v18  ;;  %vm738_vm2 = vmpackc.low %vm274_vm1, %vm274_vm1  ;;  %v616_v21 = vld [vmem:[%s1080_s2] ss:$0 sm:$0xff] }
  0x4f   :  { %733 = vmatprep.subr.bf16.mxu1 %v910_v0  ;;  %v617_v40 = vld [vmem:[%s1082_s4] ss:$0 sm:$0xff]  ;;  %p881_p7 = por %p880_p6, %p879_p5 }
  0x50   :  { %v623_v47 = vld [vmem:[%s1085_s7] ss:$0 sm:$0xff] }
  0x51   :  { %v626_v57 = vld [vmem:[%s1083_s5] ss:$0 sm:$0xff]  ;;  %p882_p8 = pnand %p881_p7, %p875_p4 }
  0x55   :  { %729 = vmatpush3.bf16.xpose.msra.mxu0 %v1026_v7 }
  0x56   :  { %744 = vmatprep.subr.bf16.mxu0 %v910_v0  ;;  %735 = vmatpush3.bf16.xpose.msra.mxu1 %v734_v17 }
  0x57   :  { %736 = vmatprep.subr.bf16.mxu1 %v910_v0 }
  0x5c   :  { %667 = vmatmul.mubr.f32.vlgmr.msra.gmra.mrb[0].mxu0 %v83_v8 }
  0x5d   :  { %699 = vmatprep.mubr.msk.f32.mxu0 %vm911_vm0, %v912_v1  ;;  %746 = vmatpush3.bf16.msra.mxu0 %v737_v16 }
  0x5e   :  { %747 = vmatprep.subr.bf16.mxu0 %v910_v0  ;;  %678 = vmatmul.mubr.f32.vlgmr.msra.gmra.mrb[0].mxu1 %v83_v8 }
  0x5f   :  { %739 = vmatpush3.bf16.xpose.msk.msra.mxu1 %vm738_vm2, %v737_v16  ;;  %688 = vmatprep.mubr.msk.f32.mxu1 %vm911_vm0, %v912_v1 }
  0x60   :  { %740 = vmatprep.subr.bf16.mxu1 %v910_v0 }
  0x61   :  { %749 = vmatpush3.bf16.msra.mxu0 %v741_v20 }
  0x62   :  { %750 = vmatprep.subr.bf16.mxu0 %v910_v0 }
  0x67   :  { %743 = vmatpush3.bf16.xpose.msk.msra.mxu1 %vm738_vm2, %v741_v20 }
 0x12f   :  { %v172_v22 = vpop.f32.mrb[0].mxu0 }
 0x130   :  { %v173_v23 = vadd.f32 %v616_v21, %v172_v22  ;;  %v668_v24 = vpop.f32.mrb[1].mxu0 }
 0x132   :  { %v179_v25 = vand.u32 2147483647, %v173_v23  ;;  %v176_v36 = vmax.f32 %v173_v23, 0.0  ;;  %vm177_vm4 = vcmp.ne.f32.partialorder %v173_v23, %v173_v23 }
 0x134   :  { %v180_v26 = vsub.f32 0.0, %v179_v25 }
 0x136   :  { %v181_v27 = vmul.f32 1.442695, %v180_v26 }
 0x138   :  { %778 = vpow2.f32 %v181_v27 }
 0x142   :  { %v779_v28 = vpop.eup %778 }
 0x143   :  { %v183_v29 = vadd.f32 1.0, %v779_v28  ;;  %v186_v30 = vmul.f32 -0.5, %v779_v28  ;;  %v189_v32 = vand.u32 2147483647, %v779_v28 }
 0x145   :  { %780 = vlog2.f32 %v183_v29  ;;  %v187_v31 = vadd.f32 1.0, %v186_v30  ;;  %vm190_vm3 = vcmp.lt.f32.partialorder %v189_v32, 0.0004427343 }
 0x147   :  { %v188_v35 = vmul.f32 %v779_v28, %v187_v31 }
 0x14f   :  { %v781_v33 = vpop.eup %780 }
 0x150   :  { %v185_v34 = vmul.f32 0.6931472, %v781_v33 }
 0x152   :  { %v191_v37 = vsel %vm190_vm3, %v188_v35, %v185_v34 }
 0x153   :  { %v192_v38 = vadd.f32 %v191_v37, %v176_v36 }
 0x155   :  { %v193_v39 = vsel %vm177_vm4, %v173_v23, %v192_v38 }
 0x156   :  { %689 = vmatmul.mubr.msk.f32.vlgmr.msra.gmra.mrb[0].mxu1 %vm274_vm1, %v193_v39  ;;  %v194_v50 = vsub.f32 0.0, %v193_v39 }
 0x158   :  { %v195_v51 = vmul.f32 1.442695, %v194_v50 }
 0x229   :  { %v356_v41 = vpop.f32.mrb[0].mxu1 }
 0x22a   :  { %v762_v42 = vadd.f32 %v617_v40, %v356_v41  ;;  %v690_v43 = vpop.f32.mrb[1].mxu1 }
 0x22c   :  { %v361_v44 = vmul.f32 0.5, %v762_v42 }
 0x22e   :  { %782 = vtanh.f32 %v361_v44 }
 0x22f   :  { %784 = vpow2.f32 %v195_v51 }
 0x238   :  { %v783_v45 = vpop.eup %782 }
 0x239   :  { %v363_v46 = vadd.f32 1.0, %v783_v45  ;;  %v785_v52 = vpop.eup %784 }
 0x23a   :  { %v197_v53 = vsub.f32 1.0, %v785_v52 }
 0x23b   :  { %v364_v48 = vmul.f32 0.5, %v363_v46 }
 0x23d   :  { %v371_v49 = vmul.f32 %v623_v47, %v364_v48 }
 0x23f   :  { %700 = vmatmul.mubr.msk.f32.vlgmr.msra.gmra.mrb[2].mxu0 %vm274_vm1, %v371_v49 }
 0x240   :  { %752 = vmatpush3.bf16.msra.mxu0 %v731_v11  ;;  %710 = vmatprep.mubr.msk.f32.mxu0 %vm911_vm0, %v912_v1 }
 0x241   :  { %753 = vmatprep.subr.bf16.mxu0 %v910_v0 }
 0x244   :  { %755 = vmatpush3.bf16.msra.mxu0 %v734_v17 }
 0x245   :  { %756 = vmatprep.subr.bf16.mxu0 %v910_v0 }
 0x247   :  { %711 = vmatmul.mubr.msk.f32.vlgmr.msra.gmra.mrb[4].mxu0 %vm274_vm1, %v371_v49 }
 0x248   :  { %758 = vmatpush3.bf16.msra.mxu0 %v1022_v4  ;;  %721 = vmatprep.mubr.msk.f32.mxu0 %vm911_vm0, %v912_v1 }
 0x249   :  { %759 = vmatprep.subr.bf16.mxu0 %v910_v0 }
 0x24c   :  { %761 = vmatpush3.bf16.msra.mxu0 %v1026_v7 }
 0x312   :  { %v441_v54 = vpop.f32.mrb[2].mxu0 }
 0x313   :  { %v445_v55 = vmul.f32 %v441_v54, %v197_v53  ;;  %v701_v56 = vpop.f32.mrb[3].mxu0 }
 0x315   :  { %722 = vmatmul.mubr.msk.f32.vlgmr.msra.gmra.mrb[4].mxu0 %vm274_vm1, %v445_v55 }
 0x3e8   :  { %v592_v58 = vpop.f32.mrb[4].mxu0 }
 0x3e9   :  { %v763_v59 = vadd.f32 %v626_v57, %v592_v58  ;;  %v723_v60 = vpop.f32.mrb[5].mxu0 }
 0x3eb   :  { %v597_v61 = vmul.f32 -0.1, %v763_v59 }
 0x3ed   :  { %598 = vst [vmem:[#allocation10] sm:$0xff] %v597_v61 }
 0x3ee   :  { %885 = shalt.err (!%p882_p8)
}
 0x3ef   :  { %s886_s18 = scalar_lea.hbm %s1086_s8, 128 }
 0x3f0   :  { %p887_p9 = scmp.ne.s32.totalorder %s1086_s8, %s886_s18  ;;  %p890_p10 = scmp.lt.u32.totalorder %s886_s18, %s1086_s8 }
 0x3f2   :  { %p892_p11 = pnand %p890_p10, %p887_p9 }
 0x3f4   :  { %895 = shalt.err (!%p892_p11)
}
 0x3f5   :  { %608 = dma.vmem_to_hbm [thread:$0]  %s606_s12, 128, %s1086_s8, [#allocation4]  }
 0x3f6   :  { %902 = dma.done.wait [#allocation4], 128  }
 0x3f7   :  { %903 = vsyncadd [#allocation4], 4294967168 }
 0x3f8   :  { %612 = vsyncpa [#allocation3], 1 }
 0x3f9   :  { %613 = vsyncpa [#allocation6], 1 }
 0x3fa   :  { %614 = vsyncpa [#allocation9], 1 }
 0x3fb   :  { %615 = vsyncpa [#allocation4], 1 }

</bundles_post_ra>
